<compile_context>
chip_gen: v5e
topology: v5e:2x2
jax: 0.10.0
libtpu: 0.0.40
codegen_flags: <defaults>
</compile_context>

<pallas_src>
import functools

import jax
import jax.numpy as jnp
from jax import lax
from jax.experimental import pallas as pl
from jax.experimental.pallas import tpu as pltpu


def _mha_kernel(x_ref, wq_ref, wk_ref, wv_ref, wo_ref, bo_ref,
                o_ref, acc_ref, *, compute_dtype, scale):
    """One (batch-tile, head) grid step.

    x_ref:    (Bt, T, E)      packed batch tile (compute_dtype)
    wq/wk/wv: (1, E, Dh)      this head's projection weights (compute_dtype)
    wo_ref:   (1, Dh, E)      this head's slice of the output projection
    bo_ref:   (1, E)          output-projection bias (f32)
    o_ref:    (Bt, T, E)      output tile (written on the last head step)
    acc_ref:  (Bt*T, E) f32   VMEM accumulator over heads
    """
    bt, t, e = x_ref.shape
    dh = wq_ref.shape[-1]

    h = pl.program_id(1)

    @pl.when(h == 0)
    def _init():
        acc_ref[...] = jnp.zeros_like(acc_ref)

    # Flatten (Bt, T) -> M rows so the projection matmuls use many MXU rows.
    x = x_ref[...].reshape(bt * t, e)

    q = jnp.dot(x, wq_ref[0], preferred_element_type=jnp.float32)   # (M, Dh)
    k = jnp.dot(x, wk_ref[0], preferred_element_type=jnp.float32)
    v = jnp.dot(x, wv_ref[0], preferred_element_type=jnp.float32)

    # Fold the 1/sqrt(Dh) scale into q (M x Dh is smaller than the T x T
    # score matrix).  Leading-dim-only reshapes: (M, Dh) -> (Bt, T, Dh).
    q3 = (q * scale).reshape(bt, t, dh).astype(compute_dtype)
    k3 = k.reshape(bt, t, dh).astype(compute_dtype)
    v3 = v.reshape(bt, t, dh).astype(compute_dtype)

    # Batched scores over the packed batch elements; contraction on the minor
    # dims (no explicit k^T), f32 accumulation.
    s = jnp.einsum('bqd,bkd->bqk', q3, k3,
                   preferred_element_type=jnp.float32)               # (Bt, T, T)

    # Causal mask generated in-kernel (VPU iota + compare; no mask input/DMA).
    row = lax.broadcasted_iota(jnp.int32, (t, t), 0)
    col = lax.broadcasted_iota(jnp.int32, (t, t), 1)
    s = jnp.where((col <= row)[None, :, :], s, -1e30)

    # Numerically-stable softmax in f32 (VPU + EUP).
    s = s - jnp.max(s, axis=-1, keepdims=True)
    p = jnp.exp(s)
    p = p * pl.reciprocal(jnp.sum(p, axis=-1, keepdims=True), approx=True)

    # (Bt, T, T) @ (Bt, T, Dh) -> (Bt, T, Dh), f32 accumulation.
    o = jnp.einsum('bqk,bkd->bqd', p.astype(compute_dtype), v3,
                   preferred_element_type=jnp.float32)

    # Output projection for this head, accumulated across heads:
    #   out += out_h @ Wproj_h   (replaces concat + single big matmul).
    acc_ref[...] += jnp.dot(o.reshape(bt * t, dh).astype(compute_dtype),
                            wo_ref[0], preferred_element_type=jnp.float32)

    @pl.when(h == pl.num_programs(1) - 1)
    def _finalize():
        out = acc_ref[...] + bo_ref[...]                             # + bias
        o_ref[...] = out.reshape(bt, t, e).astype(o_ref.dtype)


def _pick_batch_tile(batch, seq_len, target_rows=128):
    """Largest divisor of `batch` keeping Bt*T <= max(target_rows, T)."""
    cap = max(target_rows, seq_len)
    best = 1
    for bt in range(1, batch + 1):
        if batch % bt == 0 and bt * seq_len <= cap:
            best = bt
    return best


def multi_head_attention(x, wq, wk, wv, wo, bo, *, num_heads, head_size,
                         batch_tile=None, compute_dtype=jnp.float32):
    """x: (B, T, E) float32.  Weights input-major: wq/wk/wv (E, H*Dh),
    wo (H*Dh, E), bo (E,).  Returns (B, T, E) float32."""
    B, T, E = x.shape
    HD = num_heads * head_size
    assert wq.shape == (E, HD) and wk.shape == (E, HD) and wv.shape == (E, HD)
    assert wo.shape == (HD, E) and bo.shape == (E,)

    if batch_tile is None:
        batch_tile = _pick_batch_tile(B, T)
    assert B % batch_tile == 0
    bt = batch_tile
    nb = B // bt

    # One-time (outside-kernel) weight re-layout: per-head blocks so the kernel
    # never lane-slices.  Cast to compute_dtype here -> also halves weight/x
    # HBM+VMEM traffic when compute_dtype is bf16.
    wq_r = wq.reshape(E, num_heads, head_size).transpose(1, 0, 2).astype(compute_dtype)
    wk_r = wk.reshape(E, num_heads, head_size).transpose(1, 0, 2).astype(compute_dtype)
    wv_r = wv.reshape(E, num_heads, head_size).transpose(1, 0, 2).astype(compute_dtype)
    wo_r = wo.reshape(num_heads, head_size, E).astype(compute_dtype)
    bo2 = bo.reshape(1, E).astype(jnp.float32)
    xc = x.astype(compute_dtype)

    kernel = functools.partial(_mha_kernel, compute_dtype=compute_dtype,
                               scale=float(head_size) ** -0.5)

    # NOTE: tiny constant blocks (bproj) could be marked pipeline_mode=
    # pl.Buffered(1) to avoid double-buffering; omitted for portability.
    # Per-head weight blocks benefit from the default double-buffering
    # (next head's weights prefetch during compute).
    return pl.pallas_call(
        kernel,
        out_shape=jax.ShapeDtypeStruct((B, T, E), jnp.float32),
        grid_spec=pltpu.PrefetchScalarGridSpec(
            num_scalar_prefetch=0,
            grid=(nb, num_heads),                       # heads = reduction axis (last)
            in_specs=[
                pl.BlockSpec((bt, T, E), lambda b, h: (b, 0, 0)),           # x tile
                pl.BlockSpec((1, E, head_size), lambda b, h: (h, 0, 0)),    # Wq_h
                pl.BlockSpec((1, E, head_size), lambda b, h: (h, 0, 0)),    # Wk_h
                pl.BlockSpec((1, E, head_size), lambda b, h: (h, 0, 0)),    # Wv_h
                pl.BlockSpec((1, head_size, E), lambda b, h: (h, 0, 0)),    # Wproj_h
                pl.BlockSpec((1, E), lambda b, h: (0, 0)),                  # bproj
            ],
            out_specs=pl.BlockSpec((bt, T, E), lambda b, h: (b, 0, 0)),
            scratch_shapes=[pltpu.VMEM((bt * T, E), jnp.float32)],
        ),
        compiler_params=pltpu.CompilerParams(
            dimension_semantics=("parallel", "arbitrary")),
    )(xc, wq_r, wk_r, wv_r, wo_r, bo2)


def _reference(x, wq, wk, wv, wo, bo, *, num_heads, head_size):
    """Pure-JAX reference mirroring the PyTorch module (eval mode)."""
    B, T, E = x.shape
    q = x @ wq
    k = x @ wk
    v = x @ wv
    mask = jnp.tril(jnp.ones((T, T), dtype=bool))
    outs = []
    for h in range(num_heads):
        sl = slice(h * head_size, (h + 1) * head_size)
        s = (q[..., sl] @ jnp.swapaxes(k[..., sl], -1, -2)) * (head_size ** -0.5)
        s = jnp.where(mask, s, -jnp.inf)
        p = jax.nn.softmax(s, axis=-1)
        outs.append(p @ v[..., sl])
    cat = jnp.concatenate(outs, axis=-1)
    return cat @ wo + bo


if __name__ == "__main__":
    # Small, module-consistent shapes.
    B = 2            # batch
    T = 8            # sequence length (== block_size)
    n_embd = 32
    num_heads = 4
    head_size = 8
    HD = num_heads * head_size

    key = jax.random.PRNGKey(0)
    kx, kq, kk, kv, kw, kb = jax.random.split(key, 6)

    x = jax.random.normal(kx, (B, T, n_embd), dtype=jnp.float32)

    # Deterministic parameter init (PyTorch-Linear-like uniform scaling).
    lim_qkv = 1.0 / (n_embd ** 0.5)
    lim_proj = 1.0 / (HD ** 0.5)
    wq = jax.random.uniform(kq, (n_embd, HD), jnp.float32, -lim_qkv, lim_qkv)
    wk = jax.random.uniform(kk, (n_embd, HD), jnp.float32, -lim_qkv, lim_qkv)
    wv = jax.random.uniform(kv, (n_embd, HD), jnp.float32, -lim_qkv, lim_qkv)
    wo = jax.random.uniform(kw, (HD, n_embd), jnp.float32, -lim_proj, lim_proj)
    bo = jax.random.uniform(kb, (n_embd,), jnp.float32, -lim_proj, lim_proj)

    ref = _reference(x, wq, wk, wv, wo, bo,
                     num_heads=num_heads, head_size=head_size)

    # Exact (f32) path — matches PyTorch eval-mode numerics.
    out = multi_head_attention(x, wq, wk, wv, wo, bo,
                               num_heads=num_heads, head_size=head_size,
                               compute_dtype=jnp.float32)
    out = jax.block_until_ready(out)
    assert out.shape == (B, T, n_embd)
    assert jnp.allclose(out, ref, atol=5e-3, rtol=5e-3), "f32 mismatch vs reference"

    # bf16-operand / f32-accumulation fast path (MXU-friendly on v5e/v6e/v7x).
    out_bf16 = multi_head_attention(x, wq, wk, wv, wo, bo,
                                    num_heads=num_heads, head_size=head_size,
                                    compute_dtype=jnp.bfloat16)
    out_bf16 = jax.block_until_ready(out_bf16)
    assert out_bf16.shape == (B, T, n_embd)
    assert jnp.allclose(out_bf16, ref, atol=5e-2, rtol=5e-2), "bf16 mismatch vs reference"

    print("KERNEL_OK")
</pallas_src>

<mosaic_0001>
module attributes {stable_mosaic.version = 11 : i64} {
  func.func @_mha_kernel(%arg0: i32, %arg1: i32, %arg2: memref<2x8x32xf32, #tpu.memory_space<vmem>>, %arg3: memref<1x32x8xf32, #tpu.memory_space<vmem>>, %arg4: memref<1x32x8xf32, #tpu.memory_space<vmem>>, %arg5: memref<1x32x8xf32, #tpu.memory_space<vmem>>, %arg6: memref<1x8x32xf32, #tpu.memory_space<vmem>>, %arg7: memref<1x32xf32, #tpu.memory_space<vmem>>, %arg8: memref<2x8x32xf32, #tpu.memory_space<vmem>>, %arg9: memref<16x32xf32, #tpu.memory_space<vmem>>) attributes {dimension_semantics = [#tpu.dimension_semantics<parallel>, #tpu.dimension_semantics<arbitrary>], iteration_bounds = array<i64: 1, 4>, scalar_prefetch = 0 : i64, scratch_operands = 1 : i64, tpu.core_type = #tpu.core_type<tc>, window_params = [{transform_indices = @transform_0, window_bounds = array<i64: 2, 8, 32>}, {transform_indices = @transform_1, window_bounds = array<i64: 1, 32, 8>}, {transform_indices = @transform_2, window_bounds = array<i64: 1, 32, 8>}, {transform_indices = @transform_3, window_bounds = array<i64: 1, 32, 8>}, {transform_indices = @transform_4, window_bounds = array<i64: 1, 8, 32>}, {pipeline_mode = #tpu.pipeline_mode<synchronous>, transform_indices = @transform_5, window_bounds = array<i64: 1, 32>}, {transform_indices = @transform_6, window_bounds = array<i64: 2, 8, 32>}]} {
    %c0_i32 = arith.constant 0 : i32
    %0 = arith.cmpi eq, %arg1, %c0_i32 : i32
    %1 = arith.extui %0 : i1 to i32
    %c0_i32_0 = arith.constant 0 : i32
    %2 = arith.cmpi ne, %1, %c0_i32_0 : i32
    scf.if %2 {
      %cst_29 = arith.constant 0.000000e+00 : f32
      %49 = vector.broadcast %cst_29 : f32 to vector<16x32xf32>
      %c0_30 = arith.constant 0 : index
      %c0_31 = arith.constant 0 : index
      %50 = vector.load %arg9[%c0_30, %c0_31] : memref<16x32xf32, #tpu.memory_space<vmem>>, vector<16x32xf32>
      tpu.vector_store %arg9[%c0_30, %c0_31], %49 {strides = array<i32>} : memref<16x32xf32, #tpu.memory_space<vmem>>, vector<16x32xf32>,
    } else {
    }
    %c0 = arith.constant 0 : index
    %c0_1 = arith.constant 0 : index
    %c0_2 = arith.constant 0 : index
    %3 = vector.load %arg2[%c0, %c0_1, %c0_2] : memref<2x8x32xf32, #tpu.memory_space<vmem>>, vector<2x8x32xf32>
    %4 = vector.shape_cast %3 : vector<2x8x32xf32> to vector<16x32xf32>
    %c0_3 = arith.constant 0 : index
    %c0_4 = arith.constant 0 : index
    %c0_5 = arith.constant 0 : index
    %5 = vector.load %arg3[%c0_3, %c0_4, %c0_5] : memref<1x32x8xf32, #tpu.memory_space<vmem>>, vector<1x32x8xf32>
    %6 = vector.shape_cast %5 : vector<1x32x8xf32> to vector<32x8xf32>
    %cst = arith.constant dense<0.000000e+00> : vector<16x8xf32>
    %7 = tpu.matmul %4, %6, %cst {dimension_numbers = #tpu.dot_dimension_numbers<[1], [0], [0], [1], [0, 0, 1, 1], [], []>} : vector<16x32xf32>, vector<32x8xf32>, vector<16x8xf32> -> vector<16x8xf32>
    %c0_6 = arith.constant 0 : index
    %c0_7 = arith.constant 0 : index
    %c0_8 = arith.constant 0 : index
    %8 = vector.load %arg4[%c0_6, %c0_7, %c0_8] : memref<1x32x8xf32, #tpu.memory_space<vmem>>, vector<1x32x8xf32>
    %9 = vector.shape_cast %8 : vector<1x32x8xf32> to vector<32x8xf32>
    %cst_9 = arith.constant dense<0.000000e+00> : vector<16x8xf32>
    %10 = tpu.matmul %4, %9, %cst_9 {dimension_numbers = #tpu.dot_dimension_numbers<[1], [0], [0], [1], [0, 0, 1, 1], [], []>} : vector<16x32xf32>, vector<32x8xf32>, vector<16x8xf32> -> vector<16x8xf32>
    %c0_10 = arith.constant 0 : index
    %c0_11 = arith.constant 0 : index
    %c0_12 = arith.constant 0 : index
    %11 = vector.load %arg5[%c0_10, %c0_11, %c0_12] : memref<1x32x8xf32, #tpu.memory_space<vmem>>, vector<1x32x8xf32>
    %12 = vector.shape_cast %11 : vector<1x32x8xf32> to vector<32x8xf32>
    %cst_13 = arith.constant dense<0.000000e+00> : vector<16x8xf32>
    %13 = tpu.matmul %4, %12, %cst_13 {dimension_numbers = #tpu.dot_dimension_numbers<[1], [0], [0], [1], [0, 0, 1, 1], [], []>} : vector<16x32xf32>, vector<32x8xf32>, vector<16x8xf32> -> vector<16x8xf32>
    %cst_14 = arith.constant 0.353553385 : f32
    %14 = vector.broadcast %cst_14 : f32 to vector<16x8xf32>
    %15 = arith.mulf %7, %14 : vector<16x8xf32>
    %16 = vector.shape_cast %15 : vector<16x8xf32> to vector<2x8x8xf32>
    %17 = vector.shape_cast %10 : vector<16x8xf32> to vector<2x8x8xf32>
    %18 = vector.shape_cast %13 : vector<16x8xf32> to vector<2x8x8xf32>
    "tpu.trace_start"() <{level = 10 : i32, message = "bqd,bkd->bqk"}> : () -> ()
    %cst_15 = arith.constant dense<0.000000e+00> : vector<2x8x8xf32>
    %19 = tpu.matmul %16, %17, %cst_15 {dimension_numbers = #tpu.dot_dimension_numbers<[2], [2], [1], [1], [0, 0, 0, 1, 1, 1], [0], [0]>} : vector<2x8x8xf32>, vector<2x8x8xf32>, vector<2x8x8xf32> -> vector<2x8x8xf32>
    "tpu.trace_stop"() : () -> ()
    %20 = tpu.iota {dimensions = array<i32: 0>} : vector<8x8xi32>
    %21 = tpu.iota {dimensions = array<i32: 1>} : vector<8x8xi32>
    %22 = arith.cmpi sle, %21, %20 : vector<8x8xi32>
    %23 = vector.shape_cast %22 : vector<8x8xi1> to vector<1x8x8xi1>
    %cst_16 = arith.constant -1.000000e+30 : f32
    %24 = vector.shape_cast %23 : vector<1x8x8xi1> to vector<1x8x8xi1>
    %25 = vector.broadcast %24 : vector<1x8x8xi1> to vector<2x8x8xi1>
    %26 = vector.broadcast %cst_16 : f32 to vector<2x8x8xf32>
    %27 = arith.select %25, %19, %26 : vector<2x8x8xi1>, vector<2x8x8xf32>
    %cst_17 = arith.constant dense<0xFF800000> : vector<2x8xf32>
    %28 = vector.multi_reduction <maximumf>, %27, %cst_17 [2] : vector<2x8x8xf32> to vector<2x8xf32>
    %29 = vector.shape_cast %28 : vector<2x8xf32> to vector<2x8x1xf32>
    %30 = vector.broadcast %29 : vector<2x8x1xf32> to vector<2x8x8xf32>
    %31 = arith.subf %27, %30 : vector<2x8x8xf32>
    %32 = math.exp %31 : vector<2x8x8xf32>
    %cst_18 = arith.constant dense<0.000000e+00> : vector<2x8xf32>
    %33 = vector.multi_reduction <add>, %32, %cst_18 [2] : vector<2x8x8xf32> to vector<2x8xf32>
    %34 = vector.shape_cast %33 : vector<2x8xf32> to vector<2x8x1xf32>
    %35 = tpu.reciprocal %34 {approx = true} : vector<2x8x1xf32> -> vector<2x8x1xf32>
    %36 = vector.broadcast %35 : vector<2x8x1xf32> to vector<2x8x8xf32>
    %37 = arith.mulf %32, %36 : vector<2x8x8xf32>
    "tpu.trace_start"() <{level = 10 : i32, message = "bqk,bkd->bqd"}> : () -> ()
    %cst_19 = arith.constant dense<0.000000e+00> : vector<2x8x8xf32>
    %38 = tpu.matmul %37, %18, %cst_19 {dimension_numbers = #tpu.dot_dimension_numbers<[2], [1], [1], [2], [0, 0, 0, 1, 1, 2], [0], [0]>} : vector<2x8x8xf32>, vector<2x8x8xf32>, vector<2x8x8xf32> -> vector<2x8x8xf32>
    "tpu.trace_stop"() : () -> ()
    %c0_20 = arith.constant 0 : index
    %c0_21 = arith.constant 0 : index
    %39 = vector.load %arg9[%c0_20, %c0_21] : memref<16x32xf32, #tpu.memory_space<vmem>>, vector<16x32xf32>
    %40 = vector.shape_cast %38 : vector<2x8x8xf32> to vector<16x8xf32>
    %c0_22 = arith.constant 0 : index
    %c0_23 = arith.constant 0 : index
    %c0_24 = arith.constant 0 : index
    %41 = vector.load %arg6[%c0_22, %c0_23, %c0_24] : memref<1x8x32xf32, #tpu.memory_space<vmem>>, vector<1x8x32xf32>
    %42 = vector.shape_cast %41 : vector<1x8x32xf32> to vector<8x32xf32>
    %cst_25 = arith.constant dense<0.000000e+00> : vector<16x32xf32>
    %43 = tpu.matmul %40, %42, %cst_25 {dimension_numbers = #tpu.dot_dimension_numbers<[1], [0], [0], [1], [0, 0, 1, 1], [], []>} : vector<16x8xf32>, vector<8x32xf32>, vector<16x32xf32> -> vector<16x32xf32>
    %44 = arith.addf %39, %43 : vector<16x32xf32>
    %c0_26 = arith.constant 0 : index
    %c0_27 = arith.constant 0 : index
    %45 = vector.load %arg9[%c0_26, %c0_27] : memref<16x32xf32, #tpu.memory_space<vmem>>, vector<16x32xf32>
    tpu.vector_store %arg9[%c0_26, %c0_27], %44 {strides = array<i32>} : memref<16x32xf32, #tpu.memory_space<vmem>>, vector<16x32xf32>,
    %c3_i32 = arith.constant 3 : i32
    %46 = arith.cmpi eq, %arg1, %c3_i32 : i32
    %47 = arith.extui %46 : i1 to i32
    %c0_i32_28 = arith.constant 0 : i32
    %48 = arith.cmpi ne, %47, %c0_i32_28 : i32
    scf.if %48 {
      %c0_29 = arith.constant 0 : index
      %c0_30 = arith.constant 0 : index
      %49 = vector.load %arg9[%c0_29, %c0_30] : memref<16x32xf32, #tpu.memory_space<vmem>>, vector<16x32xf32>
      %c0_31 = arith.constant 0 : index
      %c0_32 = arith.constant 0 : index
      %50 = vector.load %arg7[%c0_31, %c0_32] : memref<1x32xf32, #tpu.memory_space<vmem>>, vector<1x32xf32>
      %51 = vector.broadcast %50 : vector<1x32xf32> to vector<16x32xf32>
      %52 = arith.addf %49, %51 : vector<16x32xf32>
      %53 = vector.shape_cast %52 : vector<16x32xf32> to vector<2x8x32xf32>
      %c0_33 = arith.constant 0 : index
      %c0_34 = arith.constant 0 : index
      %c0_35 = arith.constant 0 : index
      %54 = vector.load %arg8[%c0_33, %c0_34, %c0_35] : memref<2x8x32xf32, #tpu.memory_space<vmem>>, vector<2x8x32xf32>
      tpu.vector_store %arg8[%c0_33, %c0_34, %c0_35], %53 {strides = array<i32>} : memref<2x8x32xf32, #tpu.memory_space<vmem>>, vector<2x8x32xf32>,
    } else {
    }
    return
  }
  func.func @transform_0(%arg0: i32, %arg1: i32) -> (i32, i32, i32) {
    %c0_i32 = arith.constant 0 : i32
    %c0_i32_0 = arith.constant 0 : i32
    %c0_i32_1 = arith.constant 0 : i32
    return %arg0, %c0_i32, %c0_i32_0 : i32, i32, i32
  }
  func.func @transform_1(%arg0: i32, %arg1: i32) -> (i32, i32, i32) {
    %c0_i32 = arith.constant 0 : i32
    %c0_i32_0 = arith.constant 0 : i32
    %c0_i32_1 = arith.constant 0 : i32
    return %arg1, %c0_i32, %c0_i32_0 : i32, i32, i32
  }
  func.func @transform_2(%arg0: i32, %arg1: i32) -> (i32, i32, i32) {
    %c0_i32 = arith.constant 0 : i32
    %c0_i32_0 = arith.constant 0 : i32
    %c0_i32_1 = arith.constant 0 : i32
    return %arg1, %c0_i32, %c0_i32_0 : i32, i32, i32
  }
  func.func @transform_3(%arg0: i32, %arg1: i32) -> (i32, i32, i32) {
    %c0_i32 = arith.constant 0 : i32
    %c0_i32_0 = arith.constant 0 : i32
    %c0_i32_1 = arith.constant 0 : i32
    return %arg1, %c0_i32, %c0_i32_0 : i32, i32, i32
  }
  func.func @transform_4(%arg0: i32, %arg1: i32) -> (i32, i32, i32) {
    %c0_i32 = arith.constant 0 : i32
    %c0_i32_0 = arith.constant 0 : i32
    %c0_i32_1 = arith.constant 0 : i32
    return %arg1, %c0_i32, %c0_i32_0 : i32, i32, i32
  }
  func.func @transform_5(%arg0: i32, %arg1: i32) -> (i32, i32) {
    %c0_i32 = arith.constant 0 : i32
    %c0_i32_0 = arith.constant 0 : i32
    %c0_i32_1 = arith.constant 0 : i32
    return %c0_i32, %c0_i32_0 : i32, i32
  }
  func.func @transform_6(%arg0: i32, %arg1: i32) -> (i32, i32, i32) {
    %c0_i32 = arith.constant 0 : i32
    %c0_i32_0 = arith.constant 0 : i32
    %c0_i32_1 = arith.constant 0 : i32
    return %arg0, %c0_i32, %c0_i32_0 : i32, i32, i32
  }
}

</mosaic_0001>

<bundles_post_ra>
// kernel: tpu_custom_call.1
= control target key start
LH: loop header
LB: loop body
LE: loop exit
PB: predicated region body
PF: predicated region fallthrough
CT: control target
= control target key end

     0   :  { %11 = vsyncpa [#allocation4], 0  ;;  %s906_s21 = smov 0   ;;  %s908_s22 = smov 0   ;;  %s997_s0 = inlined_call_operand.vmem [shape: f32[2,8,32], index: 0, kind: input, shape index: {}]   ;;  %s998_s1 = inlined_call_operand.vmem [shape: f32[4,32,8], index: 1, kind: input, shape index: {}]   ;;  %s999_s2 = inlined_call_operand.vmem [shape: f32[4,32,8], index: 2, kind: input, shape index: {}]   ;;  %s1000_s3 = inlined_call_operand.vmem [shape: f32[4,32,8], index: 3, kind: input, shape index: {}]   ;;  %s1001_s4 = inlined_call_operand.vmem [shape: f32[4,8,32], index: 4, kind: input, shape index: {}]   ;;  %s1002_s5 = inlined_call_operand.vmem [shape: f32[1,32], index: 5, kind: input, shape index: {}]   ;;  %s1003_s6 = inlined_call_operand.hbm [shape: f32[2,8,32], index: 6, kind: output, shape index: {}]  }
   0x1   :  { %s910_s23 = smov 0  }
   0x2 LB: > { %s729_s24 = sadd.s32 4294967295, %s865_s23   ;;  %s26_s25 = sadd.s32 1, %s861_s22  ;;  %s865_s23 = sphi %s910_s23, %s17_s23   ;;  %s861_s22 = sphi %s908_s22, %s1005_s22   ;;  %s857_s21 = sphi %s906_s21, %s1004_s21  }
   0x3   : > { %p27_p0 = scmp.ge.s32.totalorder %s26_s25, 4  ;;  %p733_p1 = scmp.ge.s32.totalorder %s865_s23, 1 }
   0x4   : > { %p265_p2 = scmp.lt.s32.totalorder %s865_s23, 5 }
   0x5   : > { %s1007_s25 = smov (%p27_p0, %s26_s25), 0 }
   0x6   : > { %p266_p3 = pnand %p733_p1, %p265_p2 }
   0x7   : > { %p315_p4 = scmp.lt.s32.totalorder (!%p266_p3), %s857_s21, 3  ;;  %p741_p5 = scmp.ne.s32.totalorder (!%p266_p3), %s857_s21, 0 }
   0x8   : > { %269 = sbr.rel (%p266_p3) target bundleno = 831 (0x33f), region = 44 }
   0xd   : > { %s316_s26 = scalar_select %p315_p4, %s857_s21, 3 }
   0xe   : > { %338 = sbr.rel (%p741_p5) target bundleno = 22 (0x16), region = 48 }
   0xf   : > { %s761_s27 = sshll.u32 %s316_s26, 5  ;;  %s740_s28 = sshll.u32 %s316_s26, 3 }
  0x10   : > { %s319_s7 = scalar_lea.vmem %s998_s1, %s761_s27  ;;  %s324_s10 = scalar_lea.vmem %s999_s2, %s761_s27 }
  0x11   : > { %s938_s13 = scalar_lea.vmem %s1000_s3, %s761_s27  ;;  %s943_s16 = scalar_lea.vmem %s1001_s4, %s740_s28 }
  0x13   : > { %vm339_vm0 = vcmask 261120   ;;  %v867_v0 = vmov 0.0  }
  0x14   : > { %340 = vst.msk [vmem:[#allocation2] sm:$0xff] %vm339_vm0, %v867_v0 }
  0x15   : > { %341 = vst.msk [vmem:[#allocation2 + $0x8] sm:$0xff] %vm339_vm0, %v867_v0 }
  0x16 PF: > { %v381_v1 = vld [vmem:[%s324_s10 + $0x18] sm:$0xff]  ;;  %v380_v3 = vld [vmem:[%s324_s10 + $0x10] sm:$0xff]  ;;  %v379_v5 = vld [vmem:[%s324_s10 + $0x8] sm:$0xff]  ;;  %vm348_vm1 = vcmask 261120   ;;  %vm434_vm2 = vcmask 64512   ;;  %v487_v21 = vlaneseq  ;;  %p756_p6 = scmp.ne.s32.totalorder %s857_s21, 3 }
  0x17   : > { %v347_v2 = vld [vmem:[%s319_s7 + $0x18] sm:$0xff]  ;;  %394 = vmatpush.msra.mxu1 %v381_v1  ;;  %v346_v4 = vld [vmem:[%s319_s7 + $0x10] sm:$0xff]  ;;  %764 = vmatpush.msra.mxu2 %v381_v1  ;;  %v345_v6 = vld [vmem:[%s319_s7 + $0x8] sm:$0xff] }
  0x18   : > { %367 = vmatpush.msra.mxu0 %v347_v2  ;;  %v378_v7 = vld [vmem:[%s324_s10] sm:$0xff]  ;;  %v343_v10 = vld [vmem:[%s997_s0 + $0x8] sm:$0xff]  ;;  %v408_v17 = vld [vmem:[%s938_s13 + $0x18] sm:$0xff]  ;;  %v488_v22 = vshrl.u32 %v487_v21, 7  ;;  %v490_v23 = vand.u32 127, %v487_v21 }
  0x19   : > { %395 = vmatpush.msra.mxu1 %v380_v3  ;;  %765 = vmatpush.msra.mxu2 %v380_v3  ;;  %v344_v8 = vld [vmem:[%s319_s7] sm:$0xff]  ;;  %v407_v18 = vld [vmem:[%s938_s13 + $0x10] sm:$0xff]  ;;  %v406_v19 = vld [vmem:[%s938_s13 + $0x8] sm:$0xff] }
  0x1a   : > { %368 = vmatpush.msra.mxu0 %v346_v4  ;;  %v342_v9 = vld [vmem:[%s997_s0] sm:$0xff]  ;;  %vm491_vm3 = vcmp.le.s32.totalorder %v490_v23, %v488_v22 }
  0x1b   : > { %396 = vmatpush.msra.mxu1 %v379_v5  ;;  %766 = vmatpush.msra.mxu2 %v379_v5  ;;  %v405_v20 = vld [vmem:[%s938_s13] sm:$0xff] }
  0x1c   : > { %369 = vmatpush.msra.mxu0 %v345_v6  ;;  %v566_v42 = vld [vmem:[%s943_s16] sm:$0xff]  ;;  %v565_v54 = vld [vmem:[#allocation2 + $0x8] sm:$0xff] }
  0x1d   : > { %397 = vmatpush.msra.mxu1 %v378_v7  ;;  %767 = vmatpush.msra.mxu2 %v378_v7  ;;  %v564_v51 = vld [vmem:[#allocation2] sm:$0xff] }
  0x1e   : > { %370 = vmatpush.msra.mxu0 %v344_v8  ;;  %744 = vmatmul.msk.f32.vlgmr.msra.gmra.mxu1 %vm348_vm1, %v342_v9 }
  0x1f   : > { %742 = vmatmul.msk.f32.vlgmr.msra.gmra.mxu0 %vm348_vm1, %v342_v9  ;;  %745 = vmatmul.msk.f32.vlgmr.msra.gmra.mxu2 %vm348_vm1, %v343_v10 }
  0x20   : > { %421 = vmatpush.msrb.mxu2 %v408_v17  ;;  %588 = vmatpush.msrb.mxu1 %v566_v42 }
  0x22   : > { %422 = vmatpush.msrb.mxu2 %v407_v18 }
  0x24   : > { %423 = vmatpush.msrb.mxu2 %v406_v19 }
  0x26   : > { %424 = vmatpush.msrb.mxu2 %v405_v20 }
  0x27   : > { %743 = vmatmul.msk.f32.gmra.mxu0 %vm348_vm1, %v343_v10  ;;  %746 = vmatmul.msk.f32.vlgmr.msrb.gmra.mxu2 %vm348_vm1, %v342_v9 }
  0x2f   : > { %747 = vmatmul.msk.f32.gmra.mxu2 %vm348_vm1, %v343_v10 }
  0x9b   : > { %v399_v11 = vpop.f32.mrf.mxu1 }
  0x9c   : > { %v372_v12 = vpop.f32.mrf.mxu0  ;;  %748 = vmatpush.xpose.msk.msra.mxu3 %vm434_vm2, %v399_v11 }
  0x9d   : > { %v432_v13 = vmul.f32 0.35355338, %v372_v12 }
  0x9f   : > { %749 = vmatmul.msk.f32.vlgmr.msra.gmra.mxu3 %vm434_vm2, %v432_v13 }
  0xa2   : > { %v402_v14 = vpop.f32.mrf.mxu2 }
  0xa3   : > { %750 = vmatpush.xpose.msk.msrb.mxu3 %vm434_vm2, %v402_v14 }
  0xa4   : > { %v375_v15 = vpop.f32.mrf.mxu0 }
  0xa5   : > { %v433_v16 = vmul.f32 0.35355338, %v375_v15 }
  0xa7   : > { %751 = vmatmul.msk.f32.vlgmr.msrb.gmra.mxu3 %vm434_vm2, %v433_v16 }
  0xaa   : > { %v426_v31 = vpop.f32.mrf.mxu2 }
  0xab   : > { %536 = vmatpush.msra.mxu3 %v426_v31 }
  0xb2   : > { %v429_v41 = vpop.f32.mrf.mxu2 }
  0xb3   : > { %559 = vmatpush.msrb.mxu0 %v429_v41 }
 0x122   : > { %v458_v24 = vpop.f32.mrf.mxu3 }
 0x123   : > { %v494_v25 = vsel %vm491_vm3, %v458_v24, -1e+30 }
 0x124   : > { %v496_v26 = vsel %vm434_vm2, %v494_v25, -inf }
 0x125   : > { %497 = vmax.xlane.f32.xlu0 %v496_v26 }
 0x12a   : > { %v484_v27 = vpop.f32.mrf.mxu3 }
 0x12b   : > { %v495_v28 = vsel %vm491_vm3, %v484_v27, -1e+30 }
 0x12c   : > { %v499_v29 = vsel %vm434_vm2, %v495_v28, -inf }
 0x12d   : > { %500 = vmax.xlane.f32.xlu0 %v499_v29 }
 0x198   : > { %v498_v30 = vpop.xlane.xlu0 %497 }
 0x199   : > { %v502_v32 = vsub.f32 %v494_v25, %v498_v30 }
 0x19b   : > { %v504_v33 = vmul.f32 1.442695, %v502_v32 }
 0x19d   : > { %802 = vpow2.f32 %v504_v33 }
 0x1a0   : > { %v501_v34 = vpop.xlane.xlu0 %500 }
 0x1a1   : > { %v503_v35 = vsub.f32 %v495_v28, %v501_v34 }
 0x1a3   : > { %v803_v36 = vpop.eup %802  ;;  %v506_v37 = vmul.f32 1.442695, %v503_v35 }
 0x1a4   : > { %v508_v38 = vsel %vm434_vm2, %v803_v36, 0.0 }
 0x1a5   : > { %804 = vpow2.f32 %v506_v37  ;;  %509 = vadd.xlane.f32.xlu1 %v508_v38 }
 0x1ab   : > { %v805_v39 = vpop.eup %804 }
 0x1ac   : > { %v511_v40 = vsel %vm434_vm2, %v805_v39, 0.0 }
 0x1ad   : > { %512 = vadd.xlane.f32.xlu1 %v511_v40 }
 0x218   : > { %v510_v43 = vpop.xlane.xlu1 %509 }
 0x219   : > { %806 = vrcp.f32 %v510_v43 }
 0x21f   : > { %v807_v44 = vpop.eup %806 }
 0x220   : > { %v516_v45 = vmul.f32 %v807_v44, %v803_v36  ;;  %v513_v46 = vpop.xlane.xlu1 %512 }
 0x221   : > { %808 = vrcp.f32 %v513_v46 }
 0x222   : > { %752 = vmatmul.msk.f32.vlgmr.msra.gmra.mxu3 %vm434_vm2, %v516_v45 }
 0x227   : > { %v809_v47 = vpop.eup %808 }
 0x228   : > { %v517_v48 = vmul.f32 %v809_v47, %v805_v39 }
 0x22a   : > { %753 = vmatmul.msk.f32.vlgmr.msrb.gmra.mxu0 %vm434_vm2, %v517_v48 }
 0x2a5   : > { %v538_v49 = vpop.f32.mrf.mxu3 }
 0x2a6   : > { %754 = vmatmul.msk.f32.vlgmr.msrb.gmra.mxu1 %vm434_vm2, %v538_v49 }
 0x2a7   : > { %v561_v50 = vpop.f32.mrf.mxu0 }
 0x2ae   : > { %755 = vmatmul.msk.f32.gmra.mxu1 %vm434_vm2, %v561_v50 }
 0x323   : > { %v590_v52 = vpop.f32.mrf.mxu1 }
 0x324   : > { %v596_v53 = vadd.f32 %v590_v52, %v564_v51 }
 0x326   : > { %598 = vst.msk [vmem:[#allocation2] sm:$0xff] %vm348_vm1, %v596_v53 }
 0x32a   : > { %603 = sbr.rel (%p756_p6) target bundleno = 825 (0x339), region = 52 }
 0x32b   : > { %v593_v55 = vpop.f32.mrf.mxu1 }
 0x32c   : > { %v597_v56 = vadd.f32 %v593_v55, %v565_v54 }
 0x32e   : > { %599 = vst.msk [vmem:[#allocation2 + $0x8] sm:$0xff] %vm348_vm1, %v597_v56 }
 0x32f   : > { %v604_v57 = vld [vmem:[#allocation2] sm:$0xff] }
 0x330   : > { %v810_v58 = vld [vmem:[%s1002_s5] ss:$0 sm:$0xff] }
 0x331   : > { %v610_v60 = vadd.f32 %v810_v58, %v604_v57 }
 0x333   : > { %612 = vst.msk [vmem:[#allocation3] sm:$0xff] %vm348_vm1, %v610_v60 }
 0x335   : > { %v605_v59 = vld [vmem:[#allocation2 + $0x8] sm:$0xff] }
 0x336   : > { %v611_v61 = vadd.f32 %v810_v58, %v605_v59 }
 0x338   : > { %613 = vst.msk [vmem:[#allocation3 + $0x8] sm:$0xff] %vm348_vm1, %v611_v61 }
 0x339 PF: > { %p772_p7 = scmp.eq.s32.totalorder %s729_s24, 3  ;;  %s624_s21 = sshll.u32 %s1003_s6, 4  ;;  %s625_s21 = int_to_ptr.hbm [resolvable:$true] %s624_s21 }
 0x33a   : > { %s868_s30 = smov [#allocation3]   ;;  %s869_s8 = smov 128  }
 0x33b   : > { %s622_s7 = sshll.u32 %s868_s30, 4  ;;  %s870_s9 = smov 8   ;;  %s623_s7 = int_to_ptr.vmem [resolvable:$true] %s622_s7 }
 0x33c   : > { %769 = dma.vmem_to_hbm [thread:$0]  (%p772_p7), %s623_s7, 256, %s625_s21, [#allocation4], %s869_s8, %s869_s8, %s870_s9  }
 0x33d   : > { %852 = dma.done.wait (%p772_p7), [#allocation4], 256  }
 0x33e   : > { %854 = vsyncadd (%p772_p7), [#allocation4], 4294967040 }
 0x33f PF: > { %s17_s23 = sadd.s32 1, %s865_s23   ;;  %s1004_s21 = smov %s861_s22 }
 0x340   : > { %p14_p8 = scmp.ge.s32.totalorder %s17_s23, 6   ;;  %s1005_s22 = smov %s1007_s25 }
 0x342   :  { %16 = sbr.rel (!%p14_p8) target bundleno = 2 (0x2), region = 92 }
 0x347   :  { %641 = vsyncpa [#allocation4], 1 }
 0x348   :  { %643 = vsyncpa [#allocation4 + $0x1], 1 }

</bundles_post_ra>
